<compile_context>
chip_gen: v5e
topology: v5e:2x2
jax: 0.10.0
libtpu: 0.0.40
codegen_flags: <defaults>
</compile_context>

<pallas_src>
import functools
import math

import jax
import jax.numpy as jnp
from jax.experimental import pallas as pl
from jax.experimental.pallas import tpu as pltpu

_LANE = 128
_SUB = 8  # f32 sublanes per vreg


def _fair_norm_kernel(x_ref, scale_ref, bias_ref, o_ref):
    # x_ref: (TB, TD) native dtype; scale_ref / bias_ref: (TB, 1) float32.
    x = x_ref[...].astype(jnp.float32)
    o_ref[...] = (x * scale_ref[...] + bias_ref[...]).astype(o_ref.dtype)


def _round_down(v, m):
    return max(m, (v // m) * m)


def _sublane_pack(dtype):
    # Rows per native-dtype sublane tile: 8 for 4-byte, 16 for 2-byte, 32 for 1-byte.
    itemsize = jnp.dtype(dtype).itemsize
    return _SUB * max(1, 4 // itemsize)


def fair_identity_normalize(x, attr, mus, sigmas, *, eps=1e-6, momentum=0.0,
                            target_block_bytes=4 * 1024 * 1024):
    """Pallas TPU forward pass of Fair_Identity_Normalizer_Single.

    x:      (B, ...) activations (first axis is the batch / identity axis)
    attr:   (B,) int32 group index per sample
    mus:    (num_attr,) learned group means
    sigmas: (num_attr,) learned group scales (passed through softplus)
    momentum: Python float (baked into the affine fold; traced scalars would
              force recompiles).
    """
    orig_shape = x.shape
    B = orig_shape[0]
    D = int(math.prod(orig_shape[1:])) if len(orig_shape) > 1 else 1
    x2d = x.reshape(B, D)

    # ---- Per-row affine fold (tiny, plain JAX, f32) ----------------------
    mus_f = mus.astype(jnp.float32)
    sig_f = sigmas.astype(jnp.float32)
    den_g = jax.nn.softplus(sig_f) + jnp.float32(eps)      # stable softplus + eps
    inv_g = 1.0 / den_g
    m = float(momentum)
    scale_g = (1.0 - m) * inv_g + m
    bias_g = -(1.0 - m) * mus_f * inv_g
    scale_b = scale_g[attr].reshape(B, 1)
    bias_b = bias_g[attr].reshape(B, 1)

    # ---- Block sizing (no padding; partial blocks handled by Pallas) -----
    sub = _sublane_pack(x.dtype)
    itemsize = jnp.dtype(x.dtype).itemsize
    d_lanes = pl.cdiv(D, _LANE) * _LANE                     # sizing only, no pad
    target_elems = max(sub * _LANE, target_block_bytes // itemsize)

    if d_lanes * sub <= target_elems:
        TD = D                                              # full width (always legal)
        td_lanes = d_lanes
    else:
        td_lanes = _round_down(target_elems // sub, _LANE)  # multiple of 128, < D
        TD = td_lanes
    tb_cand = _round_down(target_elems // td_lanes, sub)    # multiple of sub pack
    TB = B if tb_cand >= B else tb_cand

    # Guarantee >= 2 grid steps along a "parallel" axis so both v7x TCs get work.
    if pl.cdiv(B, TB) == 1 and pl.cdiv(D, TD) == 1:
        if D > _LANE:
            TD = pl.cdiv(pl.cdiv(D, 2), _LANE) * _LANE      # lane-dense half of D
        elif B > sub:
            TB = pl.cdiv(pl.cdiv(B, 2), sub) * sub
        # else: tensor fits in a single tiny block; nothing to split.

    grid = (pl.cdiv(B, TB), pl.cdiv(D, TD))

    cost = pl.CostEstimate(
        flops=2 * B * D,
        transcendentals=0,
        bytes_accessed=2 * B * D * itemsize + 2 * B * 4,
    )

    # NOTE: pipeline_mode=pl.Buffered(3) on the x spec is a sweepable knob
    # (low single-digit % at most); default double-buffering kept here.
    y2d = pl.pallas_call(
        _fair_norm_kernel,
        out_shape=jax.ShapeDtypeStruct((B, D), x.dtype),
        grid_spec=pltpu.PrefetchScalarGridSpec(
            num_scalar_prefetch=0,
            grid=grid,
            in_specs=[
                pl.BlockSpec((TB, TD), lambda i, j: (i, j)),   # x tile
                pl.BlockSpec((TB, 1), lambda i, j: (i, 0)),    # per-row scale
                pl.BlockSpec((TB, 1), lambda i, j: (i, 0)),    # per-row bias
            ],
            out_specs=pl.BlockSpec((TB, TD), lambda i, j: (i, j)),
        ),
        compiler_params=pltpu.CompilerParams(
            dimension_semantics=("parallel", "parallel"),
            vmem_limit_bytes=48 << 20,
        ),
        cost_estimate=cost,
    )(x2d, scale_b, bias_b)

    return y2d.reshape(orig_shape)


def _reference(x, attr, mus, sigmas, eps, momentum):
    # Pure-JAX reference mirroring the PyTorch forward.
    denom = jax.nn.softplus(sigmas.astype(jnp.float32)) + eps
    normed = (x.astype(jnp.float32) - mus[attr][:, None]) / denom[attr][:, None]
    return ((1.0 - momentum) * normed + momentum * x.astype(jnp.float32)).astype(x.dtype)


if __name__ == "__main__":
    key = jax.random.PRNGKey(0)
    k1, k2, k3, k4 = jax.random.split(key, 4)

    num_attr, mu_init, sigma_init, momentum, eps = 3, 0.001, 1.0, 0.1, 1e-6
    mus = jax.random.normal(k1, (num_attr,), dtype=jnp.float32) * mu_init
    sigmas = jnp.ones((num_attr,), dtype=jnp.float32) * sigma_init

    # Test 1: small lane-aligned batch (B=8, dim=512).
    B, dim = 8, 512
    x = jax.random.normal(k2, (B, dim), dtype=jnp.float32)
    attr = jax.random.randint(k3, (B,), 0, num_attr, dtype=jnp.int32)
    y = jax.block_until_ready(
        fair_identity_normalize(x, attr, mus, sigmas, eps=eps, momentum=momentum))
    y_ref = _reference(x, attr, mus, sigmas, eps, momentum)
    assert y.shape == x.shape and y.dtype == x.dtype
    assert jnp.allclose(y, y_ref, atol=1e-5, rtol=1e-5), "mismatch vs reference (aligned)"

    # Test 2: unaligned feature dim (no padding path, masked last block).
    B2, dim2 = 6, 200
    x2 = jax.random.normal(k4, (B2, dim2), dtype=jnp.float32)
    attr2 = jax.random.randint(k3, (B2,), 0, num_attr, dtype=jnp.int32)
    y2 = jax.block_until_ready(
        fair_identity_normalize(x2, attr2, mus, sigmas, eps=eps, momentum=momentum))
    y2_ref = _reference(x2, attr2, mus, sigmas, eps, momentum)
    assert jnp.allclose(y2, y2_ref, atol=1e-5, rtol=1e-5), "mismatch vs reference (unaligned)"

    print("KERNEL_OK")
</pallas_src>

<mosaic_0001>
module attributes {stable_mosaic.version = 11 : i64} {
  func.func @_fair_norm_kernel(%arg0: i32, %arg1: i32, %arg2: memref<8x256xf32, #tpu.memory_space<vmem>>, %arg3: memref<8x1xf32, #tpu.memory_space<vmem>>, %arg4: memref<8x1xf32, #tpu.memory_space<vmem>>, %arg5: memref<8x256xf32, #tpu.memory_space<vmem>>) attributes {dimension_semantics = [#tpu.dimension_semantics<parallel>, #tpu.dimension_semantics<parallel>], iteration_bounds = array<i64: 1, 2>, scalar_prefetch = 0 : i64, scratch_operands = 0 : i64, tpu.core_type = #tpu.core_type<tc>, window_params = [{transform_indices = @transform_0, window_bounds = array<i64: 8, 256>}, {transform_indices = @transform_1, window_bounds = array<i64: 8, 1>}, {transform_indices = @transform_2, window_bounds = array<i64: 8, 1>}, {transform_indices = @transform_3, window_bounds = array<i64: 8, 256>}]} {
    %c0 = arith.constant 0 : index
    %c0_0 = arith.constant 0 : index
    %0 = vector.load %arg2[%c0, %c0_0] : memref<8x256xf32, #tpu.memory_space<vmem>>, vector<8x256xf32>
    %c0_1 = arith.constant 0 : index
    %c0_2 = arith.constant 0 : index
    %1 = vector.load %arg3[%c0_1, %c0_2] : memref<8x1xf32, #tpu.memory_space<vmem>>, vector<8x1xf32>
    %2 = vector.broadcast %1 : vector<8x1xf32> to vector<8x256xf32>
    %3 = arith.mulf %0, %2 : vector<8x256xf32>
    %c0_3 = arith.constant 0 : index
    %c0_4 = arith.constant 0 : index
    %4 = vector.load %arg4[%c0_3, %c0_4] : memref<8x1xf32, #tpu.memory_space<vmem>>, vector<8x1xf32>
    %5 = vector.broadcast %4 : vector<8x1xf32> to vector<8x256xf32>
    %6 = arith.addf %3, %5 : vector<8x256xf32>
    %c0_5 = arith.constant 0 : index
    %c0_6 = arith.constant 0 : index
    %7 = vector.load %arg5[%c0_5, %c0_6] : memref<8x256xf32, #tpu.memory_space<vmem>>, vector<8x256xf32>
    tpu.vector_store %arg5[%c0_5, %c0_6], %6 {strides = array<i32>} : memref<8x256xf32, #tpu.memory_space<vmem>>, vector<8x256xf32>,
    return
  }
  func.func @transform_0(%arg0: i32, %arg1: i32) -> (i32, i32) {
    %c0_i32 = arith.constant 0 : i32
    return %arg0, %arg1 : i32, i32
  }
  func.func @transform_1(%arg0: i32, %arg1: i32) -> (i32, i32) {
    %c0_i32 = arith.constant 0 : i32
    %c0_i32_0 = arith.constant 0 : i32
    return %arg0, %c0_i32 : i32, i32
  }
  func.func @transform_2(%arg0: i32, %arg1: i32) -> (i32, i32) {
    %c0_i32 = arith.constant 0 : i32
    %c0_i32_0 = arith.constant 0 : i32
    return %arg0, %c0_i32 : i32, i32
  }
  func.func @transform_3(%arg0: i32, %arg1: i32) -> (i32, i32) {
    %c0_i32 = arith.constant 0 : i32
    return %arg0, %arg1 : i32, i32
  }
}

</mosaic_0001>

<bundles_post_ra>
// kernel: tpu_custom_call.1
= control target key start
LH: loop header
LB: loop body
LE: loop exit
PB: predicated region body
PF: predicated region fallthrough
CT: control target
= control target key end

     0   :  { %8 = vsyncpa [#allocation3], 0  ;;  %s740_s0 = inlined_call_operand.hbm [shape: f32[8,512], index: 0, kind: input, shape index: {}]   ;;  %s741_s1 = inlined_call_operand.vmem [shape: f32[8,1], index: 1, kind: input, shape index: {}]   ;;  %s742_s2 = inlined_call_operand.vmem [shape: f32[8,1], index: 2, kind: input, shape index: {}]   ;;  %s743_s3 = inlined_call_operand.hbm [shape: f32[8,512], index: 3, kind: output, shape index: {}]  }
   0x1   :  { %10 = vsyncpa [#allocation3 + $0x1], 0 }
   0x2   :  { %11 = vsyncpa [#allocation4], 0 }
   0x3   :  { %13 = vsyncpa [#allocation4 + $0x1], 0  ;;  %s614_s12 = smov 0   ;;  %s616_s13 = smov 0  }
   0x4   :  { %s618_s14 = smov 0   ;;  %s620_s15 = smov 0  }
   0x5   :  { %s622_s16 = smov 0   ;;  %s624_s17 = smov 0  }
   0x6 LB: > { %s396_s18 = sadd.s32 4294967295, %s591_s17   ;;  %s397_s19 = sadd.s32 4294967294, %s591_s17   ;;  %s591_s17 = sphi %s624_s17, %s19_s17   ;;  %s587_s16 = sphi %s622_s16, %s752_s16   ;;  %s583_s15 = sphi %s620_s15, %s751_s15   ;;  %s579_s14 = sphi %s618_s14, %s750_s14   ;;  %s575_s13 = sphi %s616_s13, %s749_s13   ;;  %s571_s12 = sphi %s614_s12, %s748_s12  }
   0x7   : > { %s28_s20 = sadd.s32 1, %s587_s16  ;;  %s40_s21 = sadd.s32 1, %s579_s14 }
   0x8   : > { %p29_p0 = scmp.ge.s32.totalorder %s28_s20, 2  ;;  %p47_p1 = scmp.ne.s32.totalorder %s579_s14, %s575_s13 }
   0x9   : > { %p48_p2 = scmp.eq.s32.totalorder %s591_s17, 0  ;;  %p53_p3 = scmp.ne.s32.totalorder %s575_s13, %s571_s12 }
   0xa   : > { %s754_s20 = smov (%p29_p0, %s28_s20), 0  ;;  %p54_p5 = scmp.eq.s32.totalorder %s396_s18, 0 }
   0xb   : > { %p655_p4 = por %p48_p2, %p47_p1  ;;  %s36_s23 = ssub.s32 %s587_s16, %s754_s20 }
   0xc   : > { %p131_p6 = scmp.eq.s32.totalorder %s396_s18, 1  ;;  %p38_p7 = scmp.eq.s32.totalorder %s36_s23, 0 }
   0xd   : > { %p661_p8 = por %p54_p5, %p53_p3  ;;  %p137_p10 = scmp.eq.s32.totalorder %s397_s19, 1 }
   0xe   : > { %p665_p9 = por %p131_p6, %p47_p1  ;;  %p401_p12 = scmp.ge.s32.totalorder %s591_s17, 2 }
   0xf   : > { %s670_s26 = scalar_select %p38_p7, %s579_s14, %s40_s21  }
  0x10   : > { %p672_p11 = por %p137_p10, %p53_p3  ;;  %p427_p13 = scmp.lt.s32.totalorder %s591_s17, 2 }
  0x11   : > { %s171_s28 = sand.u32 1, %s579_s14   ;;  %s413_s30 = sshll.u32 %s587_s16, 4 }
  0x12   : > { %s402_s29 = sshll.u32 %s171_s28, 4  ;;  %s182_s6 = scalar_lea.hbm %s740_s0, %s413_s30 }
  0x13   : > { %s175_s7 = scalar_lea.vmem [#allocation2], %s402_s29  ;;  %s184_s9 = sshll.u32 %s182_s6, 4  ;;  %s185_s9 = int_to_ptr.hbm [resolvable:$true] %s184_s9 }
  0x14   : > { %s186_s8 = sshll.u32 %s175_s7, 4  ;;  %p420_p0 = pnand %p427_p13, %p655_p4  ;;  %s187_s8 = int_to_ptr.vmem [resolvable:$true] %s186_s8 }
  0x15   : > { %p405_p1 = scmp.ge.s32.totalorder %s591_s17, 1  ;;  %p191_p2 = scmp.lt.s32.totalorder %s591_s17, 3 }
  0x16   : > { %s172_s10 = scalar_lea.sflag [#allocation3], %s171_s28 }
  0x17   : > { %422 = dma.hbm_to_vmem [thread:$0]  (!%p420_p0), %s185_s9, 256, %s187_s8, %s172_s10  }
  0x18   : > { %p192_p3 = pnand %p405_p1, %p191_p2 }
  0x19   : > { %s688_s11 = sand.u32 (!%p192_p3), 1, %s575_s13  }
  0x1a   : > { %195 = sbr.rel (%p192_p3) target bundleno = 163 (0xa3), region = 32  ;;  %s406_s18 = sshll.u32 (!%p192_p3), %s688_s11, 4 }
  0x1b   : > { %s198_s19 = scalar_lea.sflag (!%p192_p3), [#allocation3], %s688_s11  ;;  %s201_s21 = scalar_lea.vmem (!%p192_p3), [#allocation2], %s406_s18 }
  0x1f   : > { %562 = dma.done.wait (%p661_p8), %s198_s19, 256  }
  0x20   : > { %564 = vsyncadd (%p661_p8), %s198_s19, 4294967040  ;;  %v593_v0 = vmov 0   ;;  %v245_v1 = vld [vmem:[%s741_s1] sm:$0xff]  ;;  %s414_s30 = sshll.u32 %s583_s15, 4  ;;  %v244_v5 = vld [vmem:[%s201_s21 + $0x8] sm:$0xff]  ;;  %s232_s6 = scalar_lea.vmem [#allocation5], %s406_s18 }
  0x21   : > { %478 = vset.pattern.permute.xlu0 %v593_v0  ;;  %v253_v2 = vld [vmem:[%s742_s2] sm:$0xff]  ;;  %s277_s5 = scalar_lea.hbm %s743_s3, %s414_s30  ;;  %s279_s7 = sshll.u32 %s232_s6, 4  ;;  %s280_s7 = int_to_ptr.vmem [resolvable:$true] %s279_s7 }
  0x22   : > { %248 = vperm.xlu0 %478, %v245_v1   ;;  %v243_v4 = vld [vmem:[%s201_s21] sm:$0xff]  ;;  %s281_s8 = sshll.u32 %s277_s5, 4  ;;  %s264_s15 = scalar_lea.sflag [#allocation4], %s688_s11  ;;  %s282_s8 = int_to_ptr.hbm [resolvable:$true] %s281_s8 }
  0x23   : > { %s523_s9 = sshra.s32 %s282_s8, 4  ;;  %s529_s18 = scalar_lea.hbm %s743_s3, 32  ;;  %s524_s9 = int_to_ptr.hbm [resolvable:$true] %s523_s9 }
  0x24   : > { %s525_s10 = scalar_lea.hbm %s524_s9, 16  ;;  %p530_p7 = scmp.lt.s32.totalorder %s524_s9, %s743_s3 }
  0x25   : > { %p526_p4 = scmp.ne.s32.totalorder %s524_s9, %s525_s10  ;;  %p531_p8 = scmp.lt.s32.totalorder %s529_s18, %s525_s10 }
  0x27   : > { %p527_p5 = pnand %p526_p4, %p665_p9  ;;  %p532_p10 = por %p531_p8, %p530_p7 }
  0x29   : > { %p528_p6 = pneg %p527_p5 }
  0x2a   : > { %256 = vperm.xlu0 %478, %v253_v2  }
  0x2b   : > { %p533_p13 = pnand %p532_p10, %p528_p6 }
  0x94   : > { %v249_v3 = vpop.permute.xlu0 %248 }
  0x95   : > { %v251_v6 = vmul.f32 %v249_v3, %v243_v4  ;;  %v252_v7 = vmul.f32 %v249_v3, %v244_v5 }
  0x9c   : > { %v257_v8 = vpop.permute.xlu0 %256 }
  0x9d   : > { %v259_v9 = vadd.f32 %v257_v8, %v251_v6  ;;  %v260_v10 = vadd.f32 %v257_v8, %v252_v7 }
  0x9f   : > { %261 = vst [vmem:[%s232_s6] sm:$0xff] %v259_v9 }
  0xa0   : > { %262 = vst [vmem:[%s232_s6 + $0x8] sm:$0xff] %v260_v10 }
  0xa1   : > { %536 = shalt.err (!%p533_p13)
}
  0xa2   : > { %417 = dma.vmem_to_hbm [thread:$0]  (%p665_p9), %s280_s7, 256, %s282_s8, %s264_s15  }
  0xa3 PF: > { %s293_s11 = sand.u32 1, %s571_s12   ;;  %p424_p0 = pnand %p401_p12, %p672_p11 }
  0xa4   : > { %s294_s28 = scalar_lea.sflag [#allocation4], %s293_s11 }
  0xa5   : > { %p425_p1 = pneg %p424_p0 }
  0xa7   : > { %566 = dma.done.wait (%p425_p1), %s294_s28, 256  }
  0xa8   : > { %568 = vsyncadd (%p425_p1), %s294_s28, 4294967040  ;;  %s19_s17 = sadd.s32 1, %s591_s17   ;;  %s748_s12 = smov %s575_s13 }
  0xa9   : > { %p16_p2 = scmp.ge.s32.totalorder %s19_s17, 4   ;;  %s749_s13 = smov %s579_s14 }
  0xaa   : > { %s750_s14 = smov %s670_s26  ;;  %s751_s15 = smov %s587_s16 }
  0xab   : > { %s752_s16 = smov %s754_s20  ;;  %18 = sbr.rel (!%p16_p2) target bundleno = 6 (0x6), region = 83 }
  0xb0   :  { %300 = vsyncpa [#allocation3], 1 }
  0xb1   :  { %302 = vsyncpa [#allocation3 + $0x1], 1 }
  0xb2   :  { %303 = vsyncpa [#allocation4], 1 }
  0xb3   :  { %305 = vsyncpa [#allocation4 + $0x1], 1 }

</bundles_post_ra>
